<compile_context>
chip_gen: v5e
topology: v5e:2x2
jax: 0.10.0
libtpu: 0.0.40
codegen_flags: <defaults>
</compile_context>

<pallas_src>
import functools

import jax
import jax.numpy as jnp
from jax.experimental import pallas as pl
from jax.experimental.pallas import tpu as pltpu

width_mult_list = [0.67, 1]

_EPS = 1e-5

# ~2 MiB of f32 per x tile: measured sweet spot for mem-bound tiled kernels.
_TILE_BUDGET_ELEMS = 512 * 1024
_HW_BLK_CAP = 4096            # keeps the unrolled 128-lane chunk loop short
_MAX_CHUNKS = 256             # bound on n_blk * (hw_blk // 128)


def _largest_divisor(n, cap, step):
    """Largest divisor of n that is <= cap and a multiple of `step` (or None)."""
    cap = min(cap, n)
    d = (cap // step) * step
    while d >= step:
        if n % d == 0:
            return d
        d -= step
    return None


def _choose_tiles(N, C, HW, budget=_TILE_BUDGET_ELEMS):
    """Pick (n_blk, c_blk, hw_blk) so n_blk*c_blk*hw_blk <= budget, lane-dense."""
    hw_cap = min(HW, _HW_BLK_CAP, budget)
    hw_blk = _largest_divisor(HW, hw_cap, 128)
    if hw_blk is None:                       # HW < 128 or no 128-multiple divisor
        hw_blk = _largest_divisor(HW, hw_cap, 1)
    c_cap = max(1, budget // hw_blk)
    c_blk = _largest_divisor(C, c_cap, 8)
    if c_blk is None:
        c_blk = _largest_divisor(C, c_cap, 1)
    n_cap = max(1, budget // (hw_blk * c_blk))
    if hw_blk % 128 == 0:
        n_cap = min(n_cap, max(1, (_MAX_CHUNKS * 128) // hw_blk))
    n_blk = _largest_divisor(N, n_cap, 1)
    return n_blk, c_blk, hw_blk


def _bn_stats_kernel(x_ref, g_ref, b_ref, scale_ref, shift_ref, acc_ref,
                     *, inv_m, eps, n_blk, hw_blk, lane_partials):
    n = pl.program_id(1)
    h = pl.program_id(2)

    @pl.when((n == 0) & (h == 0))
    def _init():
        acc_ref[...] = jnp.zeros_like(acc_ref)

    ps = None
    ss = None
    if lane_partials:
        # Fold the (n_blk, hw_blk) extent into 128-lane partials with plain
        # VPU adds (lane-aligned static slices => cheap vreg selection, no
        # relayout).  The single cross-lane XLU reduce happens only once, in
        # the finalize.
        n_chunks = hw_blk // 128
        for b in range(n_blk):
            for j in range(n_chunks):
                chunk = x_ref[b, :, j * 128:(j + 1) * 128].astype(jnp.float32)
                if ps is None:
                    ps = chunk
                    ss = chunk * chunk
                else:
                    ps = ps + chunk
                    ss = ss + chunk * chunk
    else:
        # HW block not a multiple of 128: fall back to a per-slab reduce.
        for b in range(n_blk):
            xb = x_ref[b].astype(jnp.float32)
            psb = jnp.sum(xb, axis=-1, keepdims=True)
            ssb = jnp.sum(xb * xb, axis=-1, keepdims=True)
            if ps is None:
                ps, ss = psb, ssb
            else:
                ps = ps + psb
                ss = ss + ssb

    acc_ref[0] += ps
    acc_ref[1] += ss

    is_last = ((n == pl.num_programs(1) - 1) &
               (h == pl.num_programs(2) - 1))

    @pl.when(is_last)
    def _finalize():
        tot = jnp.sum(acc_ref[0], axis=-1, keepdims=True)     # (c_blk, 1)
        tot_sq = jnp.sum(acc_ref[1], axis=-1, keepdims=True)  # (c_blk, 1)
        mean = tot * inv_m                                     # uses total N*H*W
        # Biased variance via f32 accumulators; clamp tiny negative values
        # from E[x^2] - E[x]^2 cancellation.
        var = jnp.maximum(tot_sq * inv_m - mean * mean, 0.0)
        scale = g_ref[...].astype(jnp.float32) * jax.lax.rsqrt(var + eps)
        shift = b_ref[...].astype(jnp.float32) - mean * scale
        scale_ref[...] = scale
        shift_ref[...] = shift


def _bn_apply_kernel(x_ref, scale_ref, shift_ref, o_ref, *, n_blk):
    scale = scale_ref[...]                                     # (c_blk, 1) f32
    shift = shift_ref[...]
    # Affine already folded into per-channel scale/shift: one FMA per element,
    # written back lane-dense in the original (N, C, HW) layout.
    for b in range(n_blk):
        x = x_ref[b].astype(jnp.float32)                       # (c_blk, hw_blk)
        o_ref[b] = (x * scale + shift).astype(o_ref.dtype)


def switchable_batchnorm2d(x, gamma, beta, *, eps=_EPS):
    """x: (N, C, H, W) NCHW.  gamma/beta: (C,).  Returns (N, C, H, W)."""
    N, C, H, W = x.shape
    assert gamma.shape == (C,) and beta.shape == (C,)
    HW = H * W
    M = N * HW

    # Free views only (no transposes, no extra HBM traffic).
    x3 = x.reshape(N, C, HW)
    g2 = gamma.reshape(C, 1)
    b2 = beta.reshape(C, 1)

    n_blk, c_blk, hw_blk = _choose_tiles(N, C, HW)
    lane_partials = (hw_blk % 128 == 0)
    acc_lanes = 128 if lane_partials else 1

    grid = (C // c_blk, N // n_blk, HW // hw_blk)

    x_spec = pl.BlockSpec((n_blk, c_blk, hw_blk), lambda c, n, h: (n, c, h))
    vec_spec = pl.BlockSpec((c_blk, 1), lambda c, n, h: (c, 0))

    # ---- pass 1: per-channel scale / shift (streaming reduction) -----------
    scale, shift = pl.pallas_call(
        functools.partial(_bn_stats_kernel, inv_m=1.0 / M, eps=eps,
                          n_blk=n_blk, hw_blk=hw_blk,
                          lane_partials=lane_partials),
        out_shape=(jax.ShapeDtypeStruct((C, 1), jnp.float32),
                   jax.ShapeDtypeStruct((C, 1), jnp.float32)),
        grid=grid,
        in_specs=[x_spec, vec_spec, vec_spec],
        out_specs=(vec_spec, vec_spec),
        scratch_shapes=[pltpu.VMEM((2, c_blk, acc_lanes), jnp.float32)],
        compiler_params=pltpu.CompilerParams(
            dimension_semantics=("parallel", "arbitrary", "arbitrary")),
    )(x3, g2, b2)

    # ---- pass 2: normalize (fully parallel, lane-dense output) -------------
    y3 = pl.pallas_call(
        functools.partial(_bn_apply_kernel, n_blk=n_blk),
        out_shape=jax.ShapeDtypeStruct((N, C, HW), x.dtype),
        grid=grid,
        in_specs=[x_spec, vec_spec, vec_spec],
        out_specs=x_spec,
        compiler_params=pltpu.CompilerParams(
            dimension_semantics=("parallel", "parallel", "parallel")),
    )(x3, scale, shift)

    return y3.reshape(N, C, H, W)


class SwitchableBatchNorm2dPallas:
    """Mirror of the PyTorch module: one BN parameter set per entry in
    num_features_list; forward uses the one selected by width_mult (max)."""

    def __init__(self, num_features_list):
        self.num_features_list = num_features_list
        self.num_features = max(num_features_list)
        # nn.BatchNorm2d default init: weight=1, bias=0 (deterministic)
        self.gammas = [jnp.ones((nf,), jnp.float32) for nf in num_features_list]
        self.betas = [jnp.zeros((nf,), jnp.float32) for nf in num_features_list]
        self.width_mult = max(width_mult_list)
        self.ignore_model_profiling = True
        # TODO(synk): running_mean/running_var buffers are not tracked/updated
        # (training-mode batch statistics only, matching the forward semantics).

    def __call__(self, x):
        idx = width_mult_list.index(self.width_mult)
        gamma, beta = self.gammas[idx], self.betas[idx]
        if gamma.shape[0] != x.shape[1]:
            raise ValueError(
                "selected BN width (%d features) does not match input channels (%d)"
                % (gamma.shape[0], x.shape[1]))
        return switchable_batchnorm2d(x, gamma, beta)


def _reference(x, gamma, beta, eps=_EPS):
    mean = jnp.mean(x, axis=(0, 2, 3), keepdims=True)
    var = jnp.mean((x - mean) ** 2, axis=(0, 2, 3), keepdims=True)
    return (x - mean) * jax.lax.rsqrt(var + eps) * gamma[None, :, None, None] \
        + beta[None, :, None, None]


if __name__ == "__main__":
    key = jax.random.PRNGKey(0)
    N, C, H, W = 2, 4, 16, 16
    x = jax.random.normal(key, (N, C, H, W), dtype=jnp.float32)

    # num_features_list consistent with width_mult_list: [round(0.67*C), C]
    module = SwitchableBatchNorm2dPallas([3, C])

    y = jax.block_until_ready(module(x))

    y_ref = _reference(x, module.gammas[1], module.betas[1])
    assert y.shape == (N, C, H, W)
    assert jnp.allclose(y, y_ref, atol=1e-5, rtol=1e-5), float(
        jnp.max(jnp.abs(y - y_ref)))

    print("KERNEL_OK")
</pallas_src>

<mosaic_0001>
module attributes {stable_mosaic.version = 11 : i64} {
  func.func @_bn_stats_kernel(%arg0: i32, %arg1: i32, %arg2: i32, %arg3: memref<2x4x256xf32, #tpu.memory_space<vmem>>, %arg4: memref<4x1xf32, #tpu.memory_space<vmem>>, %arg5: memref<4x1xf32, #tpu.memory_space<vmem>>, %arg6: memref<4x1xf32, #tpu.memory_space<vmem>>, %arg7: memref<4x1xf32, #tpu.memory_space<vmem>>, %arg8: memref<2x4x128xf32, #tpu.memory_space<vmem>>) attributes {dimension_semantics = [#tpu.dimension_semantics<parallel>, #tpu.dimension_semantics<arbitrary>, #tpu.dimension_semantics<arbitrary>], iteration_bounds = array<i64: 1, 1, 1>, scalar_prefetch = 0 : i64, scratch_operands = 1 : i64, tpu.core_type = #tpu.core_type<tc>, window_params = [{transform_indices = @transform_0, window_bounds = array<i64: 2, 4, 256>}, {transform_indices = @transform_1, window_bounds = array<i64: 4, 1>}, {transform_indices = @transform_2, window_bounds = array<i64: 4, 1>}, {transform_indices = @transform_3, window_bounds = array<i64: 4, 1>}, {transform_indices = @transform_4, window_bounds = array<i64: 4, 1>}]} {
    %c0_i32 = arith.constant 0 : i32
    %0 = arith.cmpi eq, %arg1, %c0_i32 : i32
    %c0_i32_0 = arith.constant 0 : i32
    %1 = arith.cmpi eq, %arg2, %c0_i32_0 : i32
    %2 = arith.andi %0, %1 : i1
    %3 = arith.extui %2 : i1 to i32
    %c0_i32_1 = arith.constant 0 : i32
    %4 = arith.cmpi ne, %3, %c0_i32_1 : i32
    scf.if %4 {
      %cst = arith.constant 0.000000e+00 : f32
      %40 = vector.broadcast %cst : f32 to vector<2x4x128xf32>
      %c0_26 = arith.constant 0 : index
      %c0_27 = arith.constant 0 : index
      %c0_28 = arith.constant 0 : index
      %41 = vector.load %arg8[%c0_26, %c0_27, %c0_28] : memref<2x4x128xf32, #tpu.memory_space<vmem>>, vector<2x4x128xf32>
      tpu.vector_store %arg8[%c0_26, %c0_27, %c0_28], %40 {strides = array<i32>} : memref<2x4x128xf32, #tpu.memory_space<vmem>>, vector<2x4x128xf32>,
    } else {
    }
    %c0 = arith.constant 0 : index
    %c0_2 = arith.constant 0 : index
    %c0_3 = arith.constant 0 : index
    %5 = vector.load %arg3[%c0, %c0_2, %c0_3] : memref<2x4x256xf32, #tpu.memory_space<vmem>>, vector<1x4x128xf32>
    %6 = vector.shape_cast %5 : vector<1x4x128xf32> to vector<4x128xf32>
    %7 = arith.mulf %6, %6 : vector<4x128xf32>
    %c0_4 = arith.constant 0 : index
    %c0_5 = arith.constant 0 : index
    %c128 = arith.constant 128 : index
    %8 = vector.load %arg3[%c0_4, %c0_5, %c128] : memref<2x4x256xf32, #tpu.memory_space<vmem>>, vector<1x4x128xf32>
    %9 = vector.shape_cast %8 : vector<1x4x128xf32> to vector<4x128xf32>
    %10 = arith.addf %6, %9 : vector<4x128xf32>
    %11 = arith.mulf %9, %9 : vector<4x128xf32>
    %12 = arith.addf %7, %11 : vector<4x128xf32>
    %c1 = arith.constant 1 : index
    %c0_6 = arith.constant 0 : index
    %c0_7 = arith.constant 0 : index
    %13 = vector.load %arg3[%c1, %c0_6, %c0_7] : memref<2x4x256xf32, #tpu.memory_space<vmem>>, vector<1x4x128xf32>
    %14 = vector.shape_cast %13 : vector<1x4x128xf32> to vector<4x128xf32>
    %15 = arith.addf %10, %14 : vector<4x128xf32>
    %16 = arith.mulf %14, %14 : vector<4x128xf32>
    %17 = arith.addf %12, %16 : vector<4x128xf32>
    %c1_8 = arith.constant 1 : index
    %c0_9 = arith.constant 0 : index
    %c128_10 = arith.constant 128 : index
    %18 = vector.load %arg3[%c1_8, %c0_9, %c128_10] : memref<2x4x256xf32, #tpu.memory_space<vmem>>, vector<1x4x128xf32>
    %19 = vector.shape_cast %18 : vector<1x4x128xf32> to vector<4x128xf32>
    %20 = arith.addf %15, %19 : vector<4x128xf32>
    %21 = arith.mulf %19, %19 : vector<4x128xf32>
    %22 = arith.addf %17, %21 : vector<4x128xf32>
    %c0_11 = arith.constant 0 : index
    %c0_12 = arith.constant 0 : index
    %c0_13 = arith.constant 0 : index
    %23 = vector.load %arg8[%c0_11, %c0_12, %c0_13] : memref<2x4x128xf32, #tpu.memory_space<vmem>>, vector<1x4x128xf32>
    %24 = vector.shape_cast %23 : vector<1x4x128xf32> to vector<4x128xf32>
    %25 = arith.addf %24, %20 : vector<4x128xf32>
    %c0_14 = arith.constant 0 : index
    %c0_15 = arith.constant 0 : index
    %c0_16 = arith.constant 0 : index
    %26 = vector.load %arg8[%c0_14, %c0_15, %c0_16] : memref<2x4x128xf32, #tpu.memory_space<vmem>>, vector<1x4x128xf32>
    %27 = vector.shape_cast %26 : vector<1x4x128xf32> to vector<4x128xf32>
    %28 = vector.shape_cast %25 : vector<4x128xf32> to vector<1x4x128xf32>
    tpu.vector_store %arg8[%c0_14, %c0_15, %c0_16], %28 {strides = array<i32>} : memref<2x4x128xf32, #tpu.memory_space<vmem>>, vector<1x4x128xf32>,
    %c1_17 = arith.constant 1 : index
    %c0_18 = arith.constant 0 : index
    %c0_19 = arith.constant 0 : index
    %29 = vector.load %arg8[%c1_17, %c0_18, %c0_19] : memref<2x4x128xf32, #tpu.memory_space<vmem>>, vector<1x4x128xf32>
    %30 = vector.shape_cast %29 : vector<1x4x128xf32> to vector<4x128xf32>
    %31 = arith.addf %30, %22 : vector<4x128xf32>
    %c1_20 = arith.constant 1 : index
    %c0_21 = arith.constant 0 : index
    %c0_22 = arith.constant 0 : index
    %32 = vector.load %arg8[%c1_20, %c0_21, %c0_22] : memref<2x4x128xf32, #tpu.memory_space<vmem>>, vector<1x4x128xf32>
    %33 = vector.shape_cast %32 : vector<1x4x128xf32> to vector<4x128xf32>
    %34 = vector.shape_cast %31 : vector<4x128xf32> to vector<1x4x128xf32>
    tpu.vector_store %arg8[%c1_20, %c0_21, %c0_22], %34 {strides = array<i32>} : memref<2x4x128xf32, #tpu.memory_space<vmem>>, vector<1x4x128xf32>,
    %c0_i32_23 = arith.constant 0 : i32
    %35 = arith.cmpi eq, %arg1, %c0_i32_23 : i32
    %c0_i32_24 = arith.constant 0 : i32
    %36 = arith.cmpi eq, %arg2, %c0_i32_24 : i32
    %37 = arith.andi %35, %36 : i1
    %38 = arith.extui %37 : i1 to i32
    %c0_i32_25 = arith.constant 0 : i32
    %39 = arith.cmpi ne, %38, %c0_i32_25 : i32
    scf.if %39 {
      %c0_26 = arith.constant 0 : index
      %c0_27 = arith.constant 0 : index
      %c0_28 = arith.constant 0 : index
      %40 = vector.load %arg8[%c0_26, %c0_27, %c0_28] : memref<2x4x128xf32, #tpu.memory_space<vmem>>, vector<1x4x128xf32>
      %41 = vector.shape_cast %40 : vector<1x4x128xf32> to vector<4x128xf32>
      %cst = arith.constant dense<0.000000e+00> : vector<4xf32>
      %42 = vector.multi_reduction <add>, %41, %cst [1] : vector<4x128xf32> to vector<4xf32>
      %43 = vector.shape_cast %42 : vector<4xf32> to vector<4x1xf32>
      %c1_29 = arith.constant 1 : index
      %c0_30 = arith.constant 0 : index
      %c0_31 = arith.constant 0 : index
      %44 = vector.load %arg8[%c1_29, %c0_30, %c0_31] : memref<2x4x128xf32, #tpu.memory_space<vmem>>, vector<1x4x128xf32>
      %45 = vector.shape_cast %44 : vector<1x4x128xf32> to vector<4x128xf32>
      %cst_32 = arith.constant dense<0.000000e+00> : vector<4xf32>
      %46 = vector.multi_reduction <add>, %45, %cst_32 [1] : vector<4x128xf32> to vector<4xf32>
      %47 = vector.shape_cast %46 : vector<4xf32> to vector<4x1xf32>
      %cst_33 = arith.constant 0.001953125 : f32
      %48 = vector.broadcast %cst_33 : f32 to vector<4x1xf32>
      %49 = arith.mulf %43, %48 : vector<4x1xf32>
      %cst_34 = arith.constant 0.001953125 : f32
      %50 = vector.broadcast %cst_34 : f32 to vector<4x1xf32>
      %51 = arith.mulf %47, %50 : vector<4x1xf32>
      %52 = arith.mulf %49, %49 : vector<4x1xf32>
      %53 = arith.subf %51, %52 : vector<4x1xf32>
      %cst_35 = arith.constant 0.000000e+00 : f32
      %54 = vector.broadcast %cst_35 : f32 to vector<4x1xf32>
      %55 = arith.maximumf %53, %54 : vector<4x1xf32>
      %c0_36 = arith.constant 0 : index
      %c0_37 = arith.constant 0 : index
      %56 = vector.load %arg4[%c0_36, %c0_37] : memref<4x1xf32, #tpu.memory_space<vmem>>, vector<4x1xf32>
      %cst_38 = arith.constant 9.99999974E-6 : f32
      %57 = vector.broadcast %cst_38 : f32 to vector<4x1xf32>
      %58 = arith.addf %55, %57 : vector<4x1xf32>
      %59 = math.rsqrt %58 : vector<4x1xf32>
      %60 = arith.mulf %56, %59 : vector<4x1xf32>
      %c0_39 = arith.constant 0 : index
      %c0_40 = arith.constant 0 : index
      %61 = vector.load %arg5[%c0_39, %c0_40] : memref<4x1xf32, #tpu.memory_space<vmem>>, vector<4x1xf32>
      %62 = arith.mulf %49, %60 : vector<4x1xf32>
      %63 = arith.subf %61, %62 : vector<4x1xf32>
      %c0_41 = arith.constant 0 : index
      %c0_42 = arith.constant 0 : index
      %64 = vector.load %arg6[%c0_41, %c0_42] : memref<4x1xf32, #tpu.memory_space<vmem>>, vector<4x1xf32>
      tpu.vector_store %arg6[%c0_41, %c0_42], %60 {strides = array<i32>} : memref<4x1xf32, #tpu.memory_space<vmem>>, vector<4x1xf32>,
      %c0_43 = arith.constant 0 : index
      %c0_44 = arith.constant 0 : index
      %65 = vector.load %arg7[%c0_43, %c0_44] : memref<4x1xf32, #tpu.memory_space<vmem>>, vector<4x1xf32>
      tpu.vector_store %arg7[%c0_43, %c0_44], %63 {strides = array<i32>} : memref<4x1xf32, #tpu.memory_space<vmem>>, vector<4x1xf32>,
    } else {
    }
    return
  }
  func.func @transform_0(%arg0: i32, %arg1: i32, %arg2: i32) -> (i32, i32, i32) {
    %c0_i32 = arith.constant 0 : i32
    return %arg1, %arg0, %arg2 : i32, i32, i32
  }
  func.func @transform_1(%arg0: i32, %arg1: i32, %arg2: i32) -> (i32, i32) {
    %c0_i32 = arith.constant 0 : i32
    %c0_i32_0 = arith.constant 0 : i32
    return %arg0, %c0_i32 : i32, i32
  }
  func.func @transform_2(%arg0: i32, %arg1: i32, %arg2: i32) -> (i32, i32) {
    %c0_i32 = arith.constant 0 : i32
    %c0_i32_0 = arith.constant 0 : i32
    return %arg0, %c0_i32 : i32, i32
  }
  func.func @transform_3(%arg0: i32, %arg1: i32, %arg2: i32) -> (i32, i32) {
    %c0_i32 = arith.constant 0 : i32
    %c0_i32_0 = arith.constant 0 : i32
    return %arg0, %c0_i32 : i32, i32
  }
  func.func @transform_4(%arg0: i32, %arg1: i32, %arg2: i32) -> (i32, i32) {
    %c0_i32 = arith.constant 0 : i32
    %c0_i32_0 = arith.constant 0 : i32
    return %arg0, %c0_i32 : i32, i32
  }
}

</mosaic_0001>

<bundles_post_ra>
// kernel: tpu_custom_call.1
= control target key start
LH: loop header
LB: loop body
LE: loop exit
PB: predicated region body
PF: predicated region fallthrough
CT: control target
= control target key end

     0   :  { %10 = vsyncpa [#allocation4], 0  ;;  %s138_s18 = smov [#allocation3]   ;;  %s139_s20 = smov 128   ;;  %s182_s0 = inlined_call_operand.hbm [shape: f32[2,4,256], index: 0, kind: input, shape index: {}]   ;;  %s183_s1 = inlined_call_operand.vmem [shape: f32[4,1], index: 1, kind: input, shape index: {}]   ;;  %s184_s2 = inlined_call_operand.vmem [shape: f32[4,1], index: 2, kind: input, shape index: {}]   ;;  %s185_s3 = inlined_call_operand.vmem [shape: f32[4,1], index: 3, kind: output, shape index: {0}]   ;;  %s186_s4 = inlined_call_operand.vmem [shape: f32[4,1], index: 4, kind: output, shape index: {1}]  }
   0x1   :  { %s15_s17 = sshll.u32 %s182_s0, 4  ;;  %s17_s19 = sshll.u32 %s138_s18, 4  ;;  %s16_s17 = int_to_ptr.hbm [resolvable:$true] %s15_s17  ;;  %s18_s19 = int_to_ptr.vmem [resolvable:$true] %s17_s19 }
   0x2   :  { %s140_s21 = smov 8  }
   0x3   :  { %23 = dma.hbm_to_vmem [thread:$0]  %s16_s17, 256, %s18_s19, [#allocation4], %s139_s20, %s139_s20, %s140_s21  }
   0x4   :  { %136 = dma.done.wait [#allocation4], 256  }
   0x5   :  { %137 = vsyncadd [#allocation4], 4294967040  ;;  %v141_v0 = vmov 0.0   ;;  %v40_v1 = vld [vmem:[#allocation3] sm:$0xf]  ;;  %vm65_vm0 = vcmask 1043456  }
   0x6   :  { %38 = vst [vmem:[#allocation2] sm:$0xf] %v141_v0  ;;  %v42_v2 = vld [vmem:[#allocation3 + $0x4] sm:$0xf]  ;;  %v47_v3 = vld [vmem:[#allocation3 + $0x8] sm:$0xf]  ;;  %v41_v4 = vmul.f32 %v40_v1, %v40_v1 }
   0x7   :  { %39 = vst [vmem:[#allocation2 + $0x4] sm:$0xf] %v141_v0  ;;  %v43_v5 = vadd.f32 %v42_v2, %v40_v1  ;;  %v44_v6 = vmul.f32 %v42_v2, %v42_v2  ;;  %v49_v7 = vmul.f32 %v47_v3, %v47_v3  ;;  %v51_v8 = vld [vmem:[#allocation3 + $0xc] sm:$0xf]  ;;  %v78_v36 = vld [vmem:[%s183_s1] sm:$0xf] }
   0x8   :  { %v53_v10 = vmul.f32 %v51_v8, %v51_v8  ;;  %vm94_vm4 = vcmask 3072   ;;  %v91_v40 = vld [vmem:[%s184_s2] sm:$0xf] }
   0x9   :  { %v48_v9 = vadd.f32 %v47_v3, %v43_v5  ;;  %v45_v11 = vadd.f32 %v44_v6, %v41_v4 }
   0xb   :  { %v52_v13 = vadd.f32 %v51_v8, %v48_v9  ;;  %v50_v14 = vadd.f32 %v49_v7, %v45_v11 }
   0xd   :  { %v55_v12 = vld [vmem:[#allocation2] sm:$0xf]  ;;  %v54_v17 = vadd.f32 %v53_v10, %v50_v14 }
   0xe   :  { %v59_v15 = vld [vmem:[#allocation2 + $0x4] sm:$0xf]  ;;  %v56_v16 = vadd.f32 %v55_v12, %v52_v13 }
   0xf   :  { %v60_v18 = vadd.f32 %v59_v15, %v54_v17 }
  0x10   :  { %57 = vst [vmem:[#allocation2] sm:$0xf] %v56_v16 }
  0x11   :  { %61 = vst [vmem:[#allocation2 + $0x4] sm:$0xf] %v60_v18 }
  0x17   :  { %v64_v19 = vld [vmem:[#allocation2] sm:$0xf] }
  0x18   :  { %v66_v20 = vsel %vm65_vm0, %v64_v19, 0.0  ;;  %v69_v21 = vld [vmem:[#allocation2 + $0x4] sm:$0xf] }
  0x19   :  { %67 = vadd.xlane.f32.xlu0 %v66_v20  ;;  %v70_v22 = vsel %vm65_vm0, %v69_v21, 0.0 }
  0x21   :  { %71 = vadd.xlane.f32.xlu0 %v70_v22 }
  0x8c   :  { %v68_v23 = vpop.xlane.xlu0 %67 }
  0x8d   :  { %v73_v24 = vmul.f32 0.001953125, %v68_v23 }
  0x8f   :  { %v75_v26 = vmul.f32 %v73_v24, %v73_v24 }
  0x94   :  { %v72_v25 = vpop.xlane.xlu0 %71 }
  0x95   :  { %v74_v27 = vmul.f32 0.001953125, %v72_v25 }
  0x97   :  { %v76_v28 = vsub.f32 %v74_v27, %v75_v26 }
  0x99   :  { %v77_v29 = vmax.f32 %v76_v28, 0.0 }
  0x9b   :  { %v79_v30 = vadd.f32 1e-05, %v77_v29 }
  0x9d   :  { %110 = vrsqrt.f32 %v79_v30  ;;  %vm86_vm2 = vweird.f32 %v79_v30 }
  0xa3   :  { %v111_v31 = vpop.eup %110 }
  0xa4   :  { %v81_v32 = vmul.f32 %v111_v31, %v79_v30  ;;  %vm87_vm1 = vweird.f32 %v111_v31 }
  0xa5   :  { %vm88_vm3 = vmor %vm86_vm2, %vm87_vm1 }
  0xa6   :  { %v82_v33 = vmul.f32 %v111_v31, %v81_v32 }
  0xa8   :  { %v83_v34 = vmul.f32 0.5, %v82_v33 }
  0xaa   :  { %v84_v35 = vsub.f32 1.5, %v83_v34 }
  0xac   :  { %v85_v37 = vmul.f32 %v111_v31, %v84_v35 }
  0xae   :  { %v89_v38 = vsel %vm88_vm3, %v111_v31, %v85_v37 }
  0xaf   :  { %v90_v39 = vmul.f32 %v89_v38, %v78_v36 }
  0xb1   :  { %v92_v41 = vmul.f32 %v90_v39, %v73_v24  ;;  %95 = vst.msk [vmem:[%s185_s3] sm:$0xf] %vm94_vm4, %v90_v39 }
  0xb3   :  { %v93_v42 = vsub.f32 %v91_v40, %v92_v41 }
  0xb5   :  { %96 = vst.msk [vmem:[%s186_s4] sm:$0xf] %vm94_vm4, %v93_v42 }
  0xb6   :  { %105 = vsyncpa [#allocation4], 1 }

</bundles_post_ra>
